<compile_context>
chip_gen: v5e
topology: v5e:2x2
jax: 0.10.0
libtpu: 0.0.40
codegen_flags: <defaults>
</compile_context>

<pallas_src>
import jax
import jax.numpy as jnp
from jax.experimental import pallas as pl
from jax.experimental.pallas import tpu as pltpu

HIDDEN = 128


def _source_kernel(x_ref, eps_ref, w0_ref, b0_ref, wr_ref, br_ref, out_ref):
    """Whole Source forward in one kernel: 5 matmuls, one lane-dense output."""
    x = x_ref[...]                                            # (1, n_states) f32

    # ---- layer 0: y = x @ [W_mu0 | W_lv0] + [b_mu0 | b_lv0] -> (1, 256) ----
    y0 = jnp.dot(x, w0_ref[...], preferred_element_type=jnp.float32) + b0_ref[...]
    h_mu = jnp.tanh(y0[:, :HIDDEN])                           # mu branch (Tanh)
    h_lv = jnp.maximum(y0[:, HIDDEN:], 0.0)                   # log_var branch (ReLU)

    def pack(hm, hl):
        # (1,128),(1,128) -> (2,256) block layout:
        #   row 0 = [h_mu, 0], row 1 = [0, h_lv]
        # so (2,256) @ (256,128) computes both branch matmuls in one MXU op.
        z = jnp.zeros_like(hm)
        top = jnp.concatenate([hm, z], axis=1)
        bot = jnp.concatenate([z, hl], axis=1)
        return jnp.concatenate([top, bot], axis=0)

    h = pack(h_mu, h_lv)                                      # (2, 256)

    # ---- layers 1..3: one (2,256) x (256,128) matmul each ----
    for i in range(3):
        y = jnp.dot(h, wr_ref[i], preferred_element_type=jnp.float32) + br_ref[i]
        h = pack(jnp.tanh(y[0:1]), jnp.maximum(y[1:2], 0.0))

    # ---- layer 4: both heads at once (output lanes zero-padded to 128) ----
    y4 = jnp.dot(h, wr_ref[3], preferred_element_type=jnp.float32) + br_ref[3]
    mu = y4[0:1]                                              # (1, 128)
    lv = y4[1:2]                                              # (1, 128)

    # ---- reparameterize: act = mu + (exp(0.5*logvar) + 1e-5) * eps ----
    std = jnp.exp(0.5 * lv) + 1e-5
    act = mu + std * eps_ref[...]

    # single lane-dense output slab: rows = act, mu, log_var
    out_ref[...] = jnp.concatenate([act, mu, lv], axis=0)     # (3, 128)


def pack_params(mu_params, lv_params):
    """Pack the 20 weight/bias tensors into 4 lane-dense arrays (do once)."""
    # Layer 0: fuse heads along the output lanes (shared input).
    w0 = jnp.concatenate([mu_params[0][0], lv_params[0][0]], axis=1)   # (n_states, 256)
    b0 = jnp.concatenate([mu_params[0][1], lv_params[0][1]], axis=1)   # (1, 256)

    # Layers 1..4: stack heads along input rows; pad outputs to 128 lanes.
    w_rest, b_rest = [], []
    for i in range(1, 5):
        wm, bm = mu_params[i]
        wl, bl = lv_params[i]
        pad = HIDDEN - wm.shape[1]
        if pad > 0:
            wm = jnp.pad(wm, ((0, 0), (0, pad)))
            wl = jnp.pad(wl, ((0, 0), (0, pad)))
            bm = jnp.pad(bm, ((0, 0), (0, pad)))
            bl = jnp.pad(bl, ((0, 0), (0, pad)))
        w_rest.append(jnp.concatenate([wm, wl], axis=0))               # (256, 128)
        b_rest.append(jnp.concatenate([bm, bl], axis=0))               # (2, 128)
    return w0, b0, jnp.stack(w_rest), jnp.stack(b_rest)                # (4,256,128),(4,2,128)


def source_forward(s, eps, packed, n_actions):
    """s: (n_states,), eps: (1, n_actions) uniform[0,1) noise (torch.rand_like).

    Returns (act, mu, log_var), each (1, n_actions) float32.
    """
    w0, b0, w_rest, b_rest = packed
    x = s.astype(jnp.float32)[None, :]                        # unsqueeze(0)
    eps_p = jnp.pad(eps.astype(jnp.float32),
                    ((0, 0), (0, HIDDEN - n_actions)))        # lane-dense (1,128)

    vmem = pl.BlockSpec(memory_space=pltpu.MemorySpace.VMEM)
    out = pl.pallas_call(
        _source_kernel,
        out_shape=jax.ShapeDtypeStruct((3, HIDDEN), jnp.float32),
        in_specs=[vmem] * 6,
        out_specs=vmem,
    )(x, eps_p, w0, b0, w_rest, b_rest)

    act = out[0:1, :n_actions]
    mu = out[1:2, :n_actions]
    lv = out[2:3, :n_actions]
    return act, mu, lv


def init_mlp_params(key, n_states, n_actions):
    """Deterministic init matching the layer shapes of Source.__init__."""
    dims = [(n_states, HIDDEN), (HIDDEN, HIDDEN), (HIDDEN, HIDDEN),
            (HIDDEN, HIDDEN), (HIDDEN, n_actions)]
    params = []
    for (fan_in, fan_out) in dims:
        key, kw, kb = jax.random.split(key, 3)
        bound = 1.0 / jnp.sqrt(fan_in)
        w = jax.random.uniform(kw, (fan_in, fan_out), jnp.float32,
                               minval=-bound, maxval=bound)
        b = jax.random.uniform(kb, (1, fan_out), jnp.float32,
                               minval=-bound, maxval=bound)
        params.append((w, b))
    return params, key


if __name__ == "__main__":
    n_states = 32
    n_actions = 8

    key = jax.random.PRNGKey(0)
    mu_params, key = init_mlp_params(key, n_states, n_actions)
    lv_params, key = init_mlp_params(key, n_states, n_actions)

    key, ks, ke = jax.random.split(key, 3)
    s = jax.random.normal(ks, (n_states,), jnp.float32)
    # eps plays the role of torch.rand_like(std): uniform [0, 1)
    eps = jax.random.uniform(ke, (1, n_actions), jnp.float32)

    packed = pack_params(mu_params, lv_params)                # done once, off hot path
    act, mu, lv = source_forward(s, eps, packed, n_actions)
    jax.block_until_ready((act, mu, lv))

    # pure-JAX reference check
    def ref_mlp(x, params, act_fn):
        h = x
        for i, (w, b) in enumerate(params):
            h = h @ w + b
            if i < len(params) - 1:
                h = act_fn(h)
        return h

    x = s.astype(jnp.float32)[None, :]
    mu_ref = ref_mlp(x, mu_params, jnp.tanh)
    lv_ref = ref_mlp(x, lv_params, lambda v: jnp.maximum(v, 0.0))
    act_ref = mu_ref + (jnp.exp(0.5 * lv_ref) + 1e-5) * eps

    assert jnp.allclose(mu, mu_ref, atol=1e-5)
    assert jnp.allclose(lv, lv_ref, atol=1e-5)
    assert jnp.allclose(act, act_ref, atol=1e-5)

    print("KERNEL_OK")
</pallas_src>

<mosaic_0001>
module attributes {stable_mosaic.version = 11 : i64} {
  func.func @_source_kernel(%arg0: memref<1x32xf32, #tpu.memory_space<vmem>>, %arg1: memref<1x128xf32, #tpu.memory_space<vmem>>, %arg2: memref<32x256xf32, #tpu.memory_space<vmem>>, %arg3: memref<1x256xf32, #tpu.memory_space<vmem>>, %arg4: memref<4x256x128xf32, #tpu.memory_space<vmem>>, %arg5: memref<4x2x128xf32, #tpu.memory_space<vmem>>, %arg6: memref<3x128xf32, #tpu.memory_space<vmem>>) attributes {dimension_semantics = [], scalar_prefetch = 0 : i64, scratch_operands = 0 : i64, tpu.core_type = #tpu.core_type<tc>} {
    %c0 = arith.constant 0 : index
    %c0_0 = arith.constant 0 : index
    %0 = vector.load %arg0[%c0, %c0_0] : memref<1x32xf32, #tpu.memory_space<vmem>>, vector<1x32xf32>
    %c0_1 = arith.constant 0 : index
    %c0_2 = arith.constant 0 : index
    %1 = vector.load %arg2[%c0_1, %c0_2] : memref<32x256xf32, #tpu.memory_space<vmem>>, vector<32x256xf32>
    %cst = arith.constant dense<0.000000e+00> : vector<1x256xf32>
    %2 = tpu.matmul %0, %1, %cst {dimension_numbers = #tpu.dot_dimension_numbers<[1], [0], [0], [1], [0, 0, 1, 1], [], []>} : vector<1x32xf32>, vector<32x256xf32>, vector<1x256xf32> -> vector<1x256xf32>
    %c0_3 = arith.constant 0 : index
    %c0_4 = arith.constant 0 : index
    %3 = vector.load %arg3[%c0_3, %c0_4] : memref<1x256xf32, #tpu.memory_space<vmem>>, vector<1x256xf32>
    %4 = arith.addf %2, %3 : vector<1x256xf32>
    %5 = vector.extract_strided_slice %4 {offsets = [0, 0], sizes = [1, 128], strides = [1, 1]} : vector<1x256xf32> to vector<1x128xf32>
    %6 = math.tanh %5 : vector<1x128xf32>
    %7 = vector.extract_strided_slice %4 {offsets = [0, 128], sizes = [1, 128], strides = [1, 1]} : vector<1x256xf32> to vector<1x128xf32>
    %cst_5 = arith.constant 0.000000e+00 : f32
    %8 = vector.broadcast %cst_5 : f32 to vector<1x128xf32>
    %9 = arith.maximumf %7, %8 : vector<1x128xf32>
    %cst_6 = arith.constant 0.000000e+00 : f32
    %10 = vector.broadcast %cst_6 : f32 to vector<1x128xf32>
    %11 = tpu.concatenate %6, %10 in 1 : vector<1x128xf32>, vector<1x128xf32> -> vector<1x256xf32>
    %12 = tpu.concatenate %10, %9 in 1 : vector<1x128xf32>, vector<1x128xf32> -> vector<1x256xf32>
    %13 = tpu.concatenate %11, %12 in 0 : vector<1x256xf32>, vector<1x256xf32> -> vector<2x256xf32>
    %c0_7 = arith.constant 0 : index
    %c0_8 = arith.constant 0 : index
    %c0_9 = arith.constant 0 : index
    %14 = vector.load %arg4[%c0_7, %c0_8, %c0_9] : memref<4x256x128xf32, #tpu.memory_space<vmem>>, vector<1x256x128xf32>
    %15 = vector.shape_cast %14 : vector<1x256x128xf32> to vector<256x128xf32>
    %cst_10 = arith.constant dense<0.000000e+00> : vector<2x128xf32>
    %16 = tpu.matmul %13, %15, %cst_10 {dimension_numbers = #tpu.dot_dimension_numbers<[1], [0], [0], [1], [0, 0, 1, 1], [], []>} : vector<2x256xf32>, vector<256x128xf32>, vector<2x128xf32> -> vector<2x128xf32>
    %c0_11 = arith.constant 0 : index
    %c0_12 = arith.constant 0 : index
    %c0_13 = arith.constant 0 : index
    %17 = vector.load %arg5[%c0_11, %c0_12, %c0_13] : memref<4x2x128xf32, #tpu.memory_space<vmem>>, vector<1x2x128xf32>
    %18 = vector.shape_cast %17 : vector<1x2x128xf32> to vector<2x128xf32>
    %19 = arith.addf %16, %18 : vector<2x128xf32>
    %20 = vector.extract_strided_slice %19 {offsets = [0, 0], sizes = [1, 128], strides = [1, 1]} : vector<2x128xf32> to vector<1x128xf32>
    %21 = math.tanh %20 : vector<1x128xf32>
    %22 = vector.extract_strided_slice %19 {offsets = [1, 0], sizes = [1, 128], strides = [1, 1]} : vector<2x128xf32> to vector<1x128xf32>
    %cst_14 = arith.constant 0.000000e+00 : f32
    %23 = vector.broadcast %cst_14 : f32 to vector<1x128xf32>
    %24 = arith.maximumf %22, %23 : vector<1x128xf32>
    %cst_15 = arith.constant 0.000000e+00 : f32
    %25 = vector.broadcast %cst_15 : f32 to vector<1x128xf32>
    %26 = tpu.concatenate %21, %25 in 1 : vector<1x128xf32>, vector<1x128xf32> -> vector<1x256xf32>
    %27 = tpu.concatenate %25, %24 in 1 : vector<1x128xf32>, vector<1x128xf32> -> vector<1x256xf32>
    %28 = tpu.concatenate %26, %27 in 0 : vector<1x256xf32>, vector<1x256xf32> -> vector<2x256xf32>
    %c1 = arith.constant 1 : index
    %c0_16 = arith.constant 0 : index
    %c0_17 = arith.constant 0 : index
    %29 = vector.load %arg4[%c1, %c0_16, %c0_17] : memref<4x256x128xf32, #tpu.memory_space<vmem>>, vector<1x256x128xf32>
    %30 = vector.shape_cast %29 : vector<1x256x128xf32> to vector<256x128xf32>
    %cst_18 = arith.constant dense<0.000000e+00> : vector<2x128xf32>
    %31 = tpu.matmul %28, %30, %cst_18 {dimension_numbers = #tpu.dot_dimension_numbers<[1], [0], [0], [1], [0, 0, 1, 1], [], []>} : vector<2x256xf32>, vector<256x128xf32>, vector<2x128xf32> -> vector<2x128xf32>
    %c1_19 = arith.constant 1 : index
    %c0_20 = arith.constant 0 : index
    %c0_21 = arith.constant 0 : index
    %32 = vector.load %arg5[%c1_19, %c0_20, %c0_21] : memref<4x2x128xf32, #tpu.memory_space<vmem>>, vector<1x2x128xf32>
    %33 = vector.shape_cast %32 : vector<1x2x128xf32> to vector<2x128xf32>
    %34 = arith.addf %31, %33 : vector<2x128xf32>
    %35 = vector.extract_strided_slice %34 {offsets = [0, 0], sizes = [1, 128], strides = [1, 1]} : vector<2x128xf32> to vector<1x128xf32>
    %36 = math.tanh %35 : vector<1x128xf32>
    %37 = vector.extract_strided_slice %34 {offsets = [1, 0], sizes = [1, 128], strides = [1, 1]} : vector<2x128xf32> to vector<1x128xf32>
    %cst_22 = arith.constant 0.000000e+00 : f32
    %38 = vector.broadcast %cst_22 : f32 to vector<1x128xf32>
    %39 = arith.maximumf %37, %38 : vector<1x128xf32>
    %cst_23 = arith.constant 0.000000e+00 : f32
    %40 = vector.broadcast %cst_23 : f32 to vector<1x128xf32>
    %41 = tpu.concatenate %36, %40 in 1 : vector<1x128xf32>, vector<1x128xf32> -> vector<1x256xf32>
    %42 = tpu.concatenate %40, %39 in 1 : vector<1x128xf32>, vector<1x128xf32> -> vector<1x256xf32>
    %43 = tpu.concatenate %41, %42 in 0 : vector<1x256xf32>, vector<1x256xf32> -> vector<2x256xf32>
    %c2 = arith.constant 2 : index
    %c0_24 = arith.constant 0 : index
    %c0_25 = arith.constant 0 : index
    %44 = vector.load %arg4[%c2, %c0_24, %c0_25] : memref<4x256x128xf32, #tpu.memory_space<vmem>>, vector<1x256x128xf32>
    %45 = vector.shape_cast %44 : vector<1x256x128xf32> to vector<256x128xf32>
    %cst_26 = arith.constant dense<0.000000e+00> : vector<2x128xf32>
    %46 = tpu.matmul %43, %45, %cst_26 {dimension_numbers = #tpu.dot_dimension_numbers<[1], [0], [0], [1], [0, 0, 1, 1], [], []>} : vector<2x256xf32>, vector<256x128xf32>, vector<2x128xf32> -> vector<2x128xf32>
    %c2_27 = arith.constant 2 : index
    %c0_28 = arith.constant 0 : index
    %c0_29 = arith.constant 0 : index
    %47 = vector.load %arg5[%c2_27, %c0_28, %c0_29] : memref<4x2x128xf32, #tpu.memory_space<vmem>>, vector<1x2x128xf32>
    %48 = vector.shape_cast %47 : vector<1x2x128xf32> to vector<2x128xf32>
    %49 = arith.addf %46, %48 : vector<2x128xf32>
    %50 = vector.extract_strided_slice %49 {offsets = [0, 0], sizes = [1, 128], strides = [1, 1]} : vector<2x128xf32> to vector<1x128xf32>
    %51 = math.tanh %50 : vector<1x128xf32>
    %52 = vector.extract_strided_slice %49 {offsets = [1, 0], sizes = [1, 128], strides = [1, 1]} : vector<2x128xf32> to vector<1x128xf32>
    %cst_30 = arith.constant 0.000000e+00 : f32
    %53 = vector.broadcast %cst_30 : f32 to vector<1x128xf32>
    %54 = arith.maximumf %52, %53 : vector<1x128xf32>
    %cst_31 = arith.constant 0.000000e+00 : f32
    %55 = vector.broadcast %cst_31 : f32 to vector<1x128xf32>
    %56 = tpu.concatenate %51, %55 in 1 : vector<1x128xf32>, vector<1x128xf32> -> vector<1x256xf32>
    %57 = tpu.concatenate %55, %54 in 1 : vector<1x128xf32>, vector<1x128xf32> -> vector<1x256xf32>
    %58 = tpu.concatenate %56, %57 in 0 : vector<1x256xf32>, vector<1x256xf32> -> vector<2x256xf32>
    %c3 = arith.constant 3 : index
    %c0_32 = arith.constant 0 : index
    %c0_33 = arith.constant 0 : index
    %59 = vector.load %arg4[%c3, %c0_32, %c0_33] : memref<4x256x128xf32, #tpu.memory_space<vmem>>, vector<1x256x128xf32>
    %60 = vector.shape_cast %59 : vector<1x256x128xf32> to vector<256x128xf32>
    %cst_34 = arith.constant dense<0.000000e+00> : vector<2x128xf32>
    %61 = tpu.matmul %58, %60, %cst_34 {dimension_numbers = #tpu.dot_dimension_numbers<[1], [0], [0], [1], [0, 0, 1, 1], [], []>} : vector<2x256xf32>, vector<256x128xf32>, vector<2x128xf32> -> vector<2x128xf32>
    %c3_35 = arith.constant 3 : index
    %c0_36 = arith.constant 0 : index
    %c0_37 = arith.constant 0 : index
    %62 = vector.load %arg5[%c3_35, %c0_36, %c0_37] : memref<4x2x128xf32, #tpu.memory_space<vmem>>, vector<1x2x128xf32>
    %63 = vector.shape_cast %62 : vector<1x2x128xf32> to vector<2x128xf32>
    %64 = arith.addf %61, %63 : vector<2x128xf32>
    %65 = vector.extract_strided_slice %64 {offsets = [0, 0], sizes = [1, 128], strides = [1, 1]} : vector<2x128xf32> to vector<1x128xf32>
    %66 = vector.extract_strided_slice %64 {offsets = [1, 0], sizes = [1, 128], strides = [1, 1]} : vector<2x128xf32> to vector<1x128xf32>
    %cst_38 = arith.constant 5.000000e-01 : f32
    %67 = vector.broadcast %cst_38 : f32 to vector<1x128xf32>
    %68 = arith.mulf %67, %66 : vector<1x128xf32>
    %69 = math.exp %68 : vector<1x128xf32>
    %cst_39 = arith.constant 9.99999974E-6 : f32
    %70 = vector.broadcast %cst_39 : f32 to vector<1x128xf32>
    %71 = arith.addf %69, %70 : vector<1x128xf32>
    %c0_40 = arith.constant 0 : index
    %c0_41 = arith.constant 0 : index
    %72 = vector.load %arg1[%c0_40, %c0_41] : memref<1x128xf32, #tpu.memory_space<vmem>>, vector<1x128xf32>
    %73 = arith.mulf %71, %72 : vector<1x128xf32>
    %74 = arith.addf %65, %73 : vector<1x128xf32>
    %75 = tpu.concatenate %74, %65, %66 in 0 : vector<1x128xf32>, vector<1x128xf32>, vector<1x128xf32> -> vector<3x128xf32>
    %c0_42 = arith.constant 0 : index
    %c0_43 = arith.constant 0 : index
    %76 = vector.load %arg6[%c0_42, %c0_43] : memref<3x128xf32, #tpu.memory_space<vmem>>, vector<3x128xf32>
    tpu.vector_store %arg6[%c0_42, %c0_43], %75 {strides = array<i32>} : memref<3x128xf32, #tpu.memory_space<vmem>>, vector<3x128xf32>,
    return
  }
}

</mosaic_0001>

<bundles_post_ra>
// kernel: tpu_custom_call.1
= control target key start
LH: loop header
LB: loop body
LE: loop exit
PB: predicated region body
PF: predicated region fallthrough
CT: control target
= control target key end

     0   :  { %11 = vsyncpa [#allocation3], 0  ;;  %s811_s0 = inlined_call_operand.hbm [shape: f32[1,32], index: 0, kind: input, shape index: {}]   ;;  %s812_s1 = inlined_call_operand.hbm [shape: f32[1,128], index: 1, kind: input, shape index: {}]   ;;  %s813_s2 = inlined_call_operand.hbm [shape: f32[32,256], index: 2, kind: input, shape index: {}]   ;;  %s814_s3 = inlined_call_operand.vmem [shape: f32[1,256], index: 3, kind: input, shape index: {}]   ;;  %s815_s4 = inlined_call_operand.hbm [shape: f32[4,256,128], index: 4, kind: input, shape index: {}]   ;;  %s816_s5 = inlined_call_operand.hbm [shape: f32[4,2,128], index: 5, kind: input, shape index: {}]   ;;  %s817_s6 = inlined_call_operand.hbm [shape: f32[3,128], index: 6, kind: output, shape index: {}]  }
   0x1   :  { %12 = vsyncpa [#allocation6], 0 }
   0x2   :  { %13 = vsyncpa [#allocation9], 0  ;;  %s31_s23 = sshll.u32 %s812_s1, 4  ;;  %s32_s23 = int_to_ptr.hbm [resolvable:$true] %s31_s23 }
   0x3   :  { %14 = vsyncpa [#allocation4], 0  ;;  %s718_s24 = smov [#allocation5]   ;;  %s56_s28 = sshll.u32 %s815_s4, 4  ;;  %s57_s28 = int_to_ptr.hbm [resolvable:$true] %s56_s28 }
   0x4   :  { %s33_s25 = sshll.u32 %s718_s24, 4  ;;  %s719_s29 = smov [#allocation8]   ;;  %s34_s25 = int_to_ptr.vmem [resolvable:$true] %s33_s25 }
   0x5   :  { %36 = dma.hbm_to_vmem [thread:$0]  %s32_s23, 16, %s34_s25, [#allocation6]  }
   0x6   :  { %s58_s30 = sshll.u32 %s719_s29, 4  ;;  %s720_s7 = smov 128   ;;  %s59_s30 = int_to_ptr.vmem [resolvable:$true] %s58_s30 }
   0x7   :  { %s721_s8 = smov 8   ;;  %s20_s1 = sshll.u32 %s811_s0, 4  ;;  %s21_s1 = int_to_ptr.hbm [resolvable:$true] %s20_s1 }
   0x8   :  { %64 = dma.hbm_to_vmem [thread:$0]  %s57_s28, 16384, %s59_s30, [#allocation9], %s720_s7, %s720_s7, %s721_s8  }
   0x9   :  { %s722_s11 = smov [#allocation2]   ;;  %s41_s4 = sshll.u32 %s813_s2, 4  ;;  %s42_s4 = int_to_ptr.hbm [resolvable:$true] %s41_s4 }
   0xa   :  { %s22_s12 = sshll.u32 %s722_s11, 4  ;;  %s723_s15 = smov [#allocation7]   ;;  %s23_s12 = int_to_ptr.vmem [resolvable:$true] %s22_s12 }
   0xb   :  { %25 = dma.hbm_to_vmem [thread:$0]  %s21_s1, 16, %s23_s12, [#allocation3]  }
   0xc   :  { %s43_s16 = sshll.u32 %s723_s15, 4  ;;  %s724_s17 = smov 256   ;;  %s44_s16 = int_to_ptr.vmem [resolvable:$true] %s43_s16 }
   0xd   :  { %s725_s18 = smov 16   ;;  %s69_s0 = sshll.u32 %s816_s5, 4  ;;  %s70_s0 = int_to_ptr.hbm [resolvable:$true] %s69_s0 }
   0xe   :  { %49 = dma.hbm_to_vmem [thread:$0]  %s42_s4, 1024, %s44_s16, [#allocation6], %s724_s17, %s724_s17, %s725_s18  }
   0xf   :  { %s726_s21 = smov [#allocation10]   ;;  %s727_s23 = smov 32  }
  0x10   :  { %s71_s22 = sshll.u32 %s726_s21, 4  ;;  %s728_s24 = smov 2   ;;  %s72_s22 = int_to_ptr.vmem [resolvable:$true] %s71_s22 }
  0x11   :  { %77 = dma.hbm_to_vmem [thread:$0]  %s70_s0, 128, %s72_s22, [#allocation9], %s727_s23, %s727_s23, %s728_s24  }
  0x12   :  { %710 = dma.done.wait [#allocation3], 16  }
  0x13   :  { %711 = vsyncadd [#allocation3], 4294967280 }
  0x14   :  { %712 = dma.done.wait [#allocation6], 1040  }
  0x15   :  { %713 = vsyncadd [#allocation6], 4294966256 }
  0x16   :  { %714 = dma.done.wait [#allocation9], 16512  }
  0x17   :  { %715 = vsyncadd [#allocation9], 4294950784  ;;  %v105_v0 = vld [vmem:[#allocation7 + $0x30] sm:$0xff]  ;;  %v103_v1 = vld [vmem:[#allocation7 + $0x20] sm:$0xff]  ;;  %vm113_vm0 = vcmask 261120   ;;  %vm165_vm1 = vcmask 1040384  }
  0x18   :  { %129 = vmatpush.msra.mxu0 %v105_v0  ;;  %v106_v2 = vld [vmem:[#allocation7 + $0x38] sm:$0xff]  ;;  %v101_v3 = vld [vmem:[#allocation7 + $0x10] sm:$0xff]  ;;  %v104_v4 = vld [vmem:[#allocation7 + $0x28] sm:$0xff]  ;;  %s517_s28 = sshll.u32 %s817_s6, 4  ;;  %vm507_vm3 = vcmask 1041408   ;;  %s518_s28 = int_to_ptr.hbm [resolvable:$true] %s517_s28 }
  0x19   :  { %149 = vmatpush.msra.mxu1 %v106_v2  ;;  %v102_v5 = vld [vmem:[#allocation7 + $0x18] sm:$0xff]  ;;  %v182_v7 = vld [vmem:[#allocation8 + $0x70] sm:$0xff]  ;;  %v99_v9 = vld [vmem:[#allocation7] sm:$0xff] }
  0x1a   :  { %130 = vmatpush.msra.mxu0 %v103_v1  ;;  %v183_v6 = vld [vmem:[#allocation8 + $0x78] sm:$0xff]  ;;  %v198_v10 = vld [vmem:[#allocation8 + $0xf0] sm:$0xff]  ;;  %v100_v12 = vld [vmem:[#allocation7 + $0x8] sm:$0xff] }
  0x1b   :  { %v199_v8 = vld [vmem:[#allocation8 + $0xf8] sm:$0xff]  ;;  %150 = vmatpush.msra.mxu1 %v104_v4  ;;  %201 = vmatpush.msra.mxu2 %v183_v6  ;;  %v181_v13 = vld [vmem:[#allocation8 + $0x68] sm:$0xff]  ;;  %v180_v15 = vld [vmem:[#allocation8 + $0x60] sm:$0xff] }
  0x1c   :  { %131 = vmatpush.msra.mxu0 %v101_v3  ;;  %v98_v11 = vld [vmem:[#allocation2] sm:$0x1]  ;;  %221 = vmatpush.msra.mxu3 %v199_v8  ;;  %v197_v14 = vld [vmem:[#allocation8 + $0xe8] sm:$0xff]  ;;  %v196_v16 = vld [vmem:[#allocation8 + $0xe0] sm:$0xff]  ;;  %v729_v8 = vmov 0.0  }
  0x1d   :  { %151 = vmatpush.msra.mxu1 %v102_v5  ;;  %202 = vmatpush.msra.mxu2 %v182_v7  ;;  %v179_v17 = vld [vmem:[#allocation8 + $0x58] sm:$0xff]  ;;  %v178_v19 = vld [vmem:[#allocation8 + $0x50] sm:$0xff]  ;;  %v177_v21 = vld [vmem:[#allocation8 + $0x48] sm:$0xff] }
  0x1e   :  { %132 = vmatpush.msra.mxu0 %v99_v9  ;;  %222 = vmatpush.msra.mxu3 %v198_v10  ;;  %v195_v18 = vld [vmem:[#allocation8 + $0xd8] sm:$0xff]  ;;  %v194_v20 = vld [vmem:[#allocation8 + $0xd0] sm:$0xff]  ;;  %v193_v22 = vld [vmem:[#allocation8 + $0xc8] sm:$0xff]  ;;  %v789_v9 = vrot.slane %v729_v8, 7 }
  0x1f   :  { %529 = vmatmul.msk.f32.vlgmr.msra.gmra.mxu0 %vm113_vm0, %v98_v11  ;;  %152 = vmatpush.msra.mxu1 %v100_v12  ;;  %v176_v23 = vld [vmem:[#allocation8 + $0x40] sm:$0xff]  ;;  %v175_v25 = vld [vmem:[#allocation8 + $0x38] sm:$0xff]  ;;  %v174_v27 = vld [vmem:[#allocation8 + $0x30] sm:$0xff] }
  0x20   :  { %530 = vmatmul.msk.f32.vlgmr.msra.gmra.mxu1 %vm113_vm0, %v98_v11  ;;  %203 = vmatpush.msra.mxu2 %v181_v13  ;;  %v192_v24 = vld [vmem:[#allocation8 + $0xc0] sm:$0xff]  ;;  %v191_v26 = vld [vmem:[#allocation8 + $0xb8] sm:$0xff]  ;;  %v173_v28 = vld [vmem:[#allocation8 + $0x28] sm:$0xff] }
  0x21   :  { %223 = vmatpush.msra.mxu3 %v197_v14  ;;  %v190_v29 = vld [vmem:[#allocation8 + $0xb0] sm:$0xff]  ;;  %v172_v30 = vld [vmem:[#allocation8 + $0x20] sm:$0xff]  ;;  %v189_v31 = vld [vmem:[#allocation8 + $0xa8] sm:$0xff] }
  0x22   :  { %204 = vmatpush.msra.mxu2 %v180_v15  ;;  %v171_v32 = vld [vmem:[#allocation8 + $0x18] sm:$0xff]  ;;  %v188_v33 = vld [vmem:[#allocation8 + $0xa0] sm:$0xff]  ;;  %v170_v34 = vld [vmem:[#allocation8 + $0x10] sm:$0xff] }
  0x23   :  { %224 = vmatpush.msra.mxu3 %v196_v16  ;;  %v187_v35 = vld [vmem:[#allocation8 + $0x98] sm:$0xff]  ;;  %v169_v36 = vld [vmem:[#allocation8 + $0x8] sm:$0xff]  ;;  %v186_v37 = vld [vmem:[#allocation8 + $0x90] sm:$0xff] }
  0x24   :  { %205 = vmatpush.msra.mxu2 %v179_v17  ;;  %v168_v38 = vld [vmem:[#allocation8] sm:$0xff]  ;;  %v185_v39 = vld [vmem:[#allocation8 + $0x88] sm:$0xff]  ;;  %v281_v41 = vld [vmem:[#allocation8 + $0x1f8] sm:$0xff] }
  0x25   :  { %225 = vmatpush.msra.mxu3 %v195_v18  ;;  %v184_v40 = vld [vmem:[#allocation8 + $0x80] sm:$0xff]  ;;  %304 = vmatpush.msrb.mxu1 %v281_v41  ;;  %v280_v42 = vld [vmem:[#allocation8 + $0x1f0] sm:$0xff]  ;;  %v265_v43 = vld [vmem:[#allocation8 + $0x178] sm:$0xff] }
  0x26   :  { %206 = vmatpush.msra.mxu2 %v178_v19  ;;  %v279_v44 = vld [vmem:[#allocation8 + $0x1e8] sm:$0xff]  ;;  %284 = vmatpush.msrb.mxu0 %v265_v43  ;;  %v264_v45 = vld [vmem:[#allocation8 + $0x170] sm:$0xff]  ;;  %v278_v47 = vld [vmem:[#allocation8 + $0x1e0] sm:$0xff] }
  0x27   :  { %226 = vmatpush.msra.mxu3 %v194_v20  ;;  %305 = vmatpush.msrb.mxu1 %v280_v42  ;;  %v263_v46 = vld [vmem:[#allocation8 + $0x168] sm:$0xff]  ;;  %v262_v48 = vld [vmem:[#allocation8 + $0x160] sm:$0xff]  ;;  %v277_v49 = vld [vmem:[#allocation8 + $0x1d8] sm:$0xff] }
  0x28   :  { %207 = vmatpush.msra.mxu2 %v177_v21  ;;  %285 = vmatpush.msrb.mxu0 %v264_v45  ;;  %v261_v50 = vld [vmem:[#allocation8 + $0x158] sm:$0xff]  ;;  %v276_v51 = vld [vmem:[#allocation8 + $0x1d0] sm:$0xff]  ;;  %v275_v53 = vld [vmem:[#allocation8 + $0x1c8] sm:$0xff] }
  0x29   :  { %227 = vmatpush.msra.mxu3 %v193_v22  ;;  %306 = vmatpush.msrb.mxu1 %v279_v44  ;;  %v260_v52 = vld [vmem:[#allocation8 + $0x150] sm:$0xff]  ;;  %v259_v54 = vld [vmem:[#allocation8 + $0x148] sm:$0xff]  ;;  %v274_v55 = vld [vmem:[#allocation8 + $0x1c0] sm:$0xff] }
  0x2a   :  { %208 = vmatpush.msra.mxu2 %v176_v23  ;;  %286 = vmatpush.msrb.mxu0 %v263_v46  ;;  %v258_v56 = vld [vmem:[#allocation8 + $0x140] sm:$0xff]  ;;  %v273_v57 = vld [vmem:[#allocation8 + $0x1b8] sm:$0xff]  ;;  %v272_v60 = vld [vmem:[#allocation8 + $0x1b0] sm:$0xff] }
  0x2b   :  { %228 = vmatpush.msra.mxu3 %v192_v24  ;;  %307 = vmatpush.msrb.mxu1 %v278_v47  ;;  %v107_v58 = vld [vmem:[%s814_s3] sm:$0x3]  ;;  %v271_v62 = vld [vmem:[#allocation8 + $0x1a8] sm:$0xff]  ;;  %v270_v0 = vld [vmem:[#allocation8 + $0x1a0] sm:$0xff]  ;;  %s730_s3 = smov [#allocation11]  }
  0x2c   :  { %209 = vmatpush.msra.mxu2 %v175_v25  ;;  %287 = vmatpush.msrb.mxu0 %v262_v48  ;;  %v257_v59 = vld [vmem:[#allocation8 + $0x138] sm:$0xff]  ;;  %v109_v61 = vperm.slane %v107_v58, 0  ;;  %v110_v63 = vperm.slane %v107_v58, 1  ;;  %vm785_vm2 = vmneg %vm165_vm1  ;;  %v256_v12 = vld [vmem:[#allocation8 + $0x130] sm:$0xff]  ;;  %s515_s25 = sshll.u32 %s730_s3, 4  ;;  %s516_s25 = int_to_ptr.vmem [resolvable:$true] %s515_s25 }
  0x2d   :  { %229 = vmatpush.msra.mxu3 %v191_v26  ;;  %308 = vmatpush.msrb.mxu1 %v277_v49  ;;  %v269_v13 = vld [vmem:[#allocation8 + $0x198] sm:$0xff]  ;;  %v255_v14 = vld [vmem:[#allocation8 + $0x128] sm:$0xff]  ;;  %v268_v15 = vld [vmem:[#allocation8 + $0x190] sm:$0xff] }
  0x2e   :  { %210 = vmatpush.msra.mxu2 %v174_v27  ;;  %288 = vmatpush.msrb.mxu0 %v261_v50  ;;  %v254_v16 = vld [vmem:[#allocation8 + $0x120] sm:$0xff]  ;;  %v267_v17 = vld [vmem:[#allocation8 + $0x188] sm:$0xff]  ;;  %v253_v18 = vld [vmem:[#allocation8 + $0x118] sm:$0xff] }
  0x2f   :  { %230 = vmatpush.msra.mxu3 %v190_v29  ;;  %309 = vmatpush.msrb.mxu1 %v276_v51  ;;  %v266_v19 = vld [vmem:[#allocation8 + $0x180] sm:$0xff]  ;;  %v252_v20 = vld [vmem:[#allocation8 + $0x110] sm:$0xff]  ;;  %v251_v21 = vld [vmem:[#allocation8 + $0x108] sm:$0xff] }
  0x30   :  { %211 = vmatpush.msra.mxu2 %v173_v28  ;;  %289 = vmatpush.msrb.mxu0 %v260_v52  ;;  %v250_v22 = vld [vmem:[#allocation8 + $0x100] sm:$0xff]  ;;  %v364_v23 = vld [vmem:[#allocation8 + $0x2f8] sm:$0xff]  ;;  %v363_v24 = vld [vmem:[#allocation8 + $0x2f0] sm:$0xff] }
  0x31   :  { %231 = vmatpush.msra.mxu3 %v189_v31  ;;  %310 = vmatpush.msrb.mxu1 %v275_v53  ;;  %v348_v25 = vld [vmem:[#allocation8 + $0x278] sm:$0xff]  ;;  %v347_v26 = vld [vmem:[#allocation8 + $0x270] sm:$0xff]  ;;  %v362_v27 = vld [vmem:[#allocation8 + $0x2e8] sm:$0xff] }
  0x32   :  { %212 = vmatpush.msra.mxu2 %v172_v30  ;;  %290 = vmatpush.msrb.mxu0 %v259_v54  ;;  %v346_v28 = vld [vmem:[#allocation8 + $0x268] sm:$0xff]  ;;  %v361_v29 = vld [vmem:[#allocation8 + $0x2e0] sm:$0xff]  ;;  %v360_v31 = vld [vmem:[#allocation8 + $0x2d8] sm:$0xff] }
  0x33   :  { %232 = vmatpush.msra.mxu3 %v188_v33  ;;  %311 = vmatpush.msrb.mxu1 %v274_v55  ;;  %v345_v30 = vld [vmem:[#allocation8 + $0x260] sm:$0xff]  ;;  %v359_v33 = vld [vmem:[#allocation8 + $0x2d0] sm:$0xff]  ;;  %v342_v46 = vld [vmem:[#allocation8 + $0x248] sm:$0xff] }
  0x34   :  { %213 = vmatpush.msra.mxu2 %v171_v32  ;;  %291 = vmatpush.msrb.mxu0 %v258_v56  ;;  %v344_v32 = vld [vmem:[#allocation8 + $0x258] sm:$0xff]  ;;  %v355_v47 = vld [vmem:[#allocation8 + $0x2b0] sm:$0xff]  ;;  %v341_v48 = vld [vmem:[#allocation8 + $0x240] sm:$0xff] }
  0x35   :  { %233 = vmatpush.msra.mxu3 %v187_v35  ;;  %312 = vmatpush.msrb.mxu1 %v273_v57  ;;  %v358_v35 = vld [vmem:[#allocation8 + $0x2c8] sm:$0xff]  ;;  %v340_v50 = vld [vmem:[#allocation8 + $0x238] sm:$0xff]  ;;  %v353_v51 = vld [vmem:[#allocation8 + $0x2a0] sm:$0xff] }
  0x36   :  { %214 = vmatpush.msra.mxu2 %v170_v34  ;;  %292 = vmatpush.msrb.mxu0 %v257_v59  ;;  %v343_v34 = vld [vmem:[#allocation8 + $0x250] sm:$0xff]  ;;  %v354_v49 = vld [vmem:[#allocation8 + $0x2a8] sm:$0xff]  ;;  %v352_v53 = vld [vmem:[#allocation8 + $0x298] sm:$0xff] }
  0x37   :  { %234 = vmatpush.msra.mxu3 %v186_v37  ;;  %313 = vmatpush.msrb.mxu1 %v272_v60  ;;  %v356_v37 = vld [vmem:[#allocation8 + $0x2b8] sm:$0xff]  ;;  %v339_v52 = vld [vmem:[#allocation8 + $0x230] sm:$0xff]  ;;  %v338_v54 = vld [vmem:[#allocation8 + $0x228] sm:$0xff] }
  0x38   :  { %215 = vmatpush.msra.mxu2 %v169_v36  ;;  %293 = vmatpush.msrb.mxu0 %v256_v12  ;;  %v357_v36 = vld [vmem:[#allocation8 + $0x2c0] sm:$0xff]  ;;  %v351_v55 = vld [vmem:[#allocation8 + $0x290] sm:$0xff]  ;;  %v350_v57 = vld [vmem:[#allocation8 + $0x288] sm:$0xff] }
  0x39   :  { %235 = vmatpush.msra.mxu3 %v185_v39  ;;  %314 = vmatpush.msrb.mxu1 %v271_v62  ;;  %v337_v56 = vld [vmem:[#allocation8 + $0x220] sm:$0xff]  ;;  %v336_v58 = vld [vmem:[#allocation8 + $0x218] sm:$0xff]  ;;  %v335_v60 = vld [vmem:[#allocation8 + $0x210] sm:$0xff] }
  0x3a   :  { %216 = vmatpush.msra.mxu2 %v168_v38  ;;  %294 = vmatpush.msrb.mxu0 %v255_v14  ;;  %v200_v38 = vld [vmem:[#allocation10] sm:$0x3]  ;;  %v443_v8 = vld [vmem:[#allocation8 + $0x3d8] sm:$0xff]  ;;  %v426_v12 = vld [vmem:[#allocation8 + $0x350] sm:$0xff] }
  0x3b   :  { %236 = vmatpush.msra.mxu3 %v184_v40  ;;  %315 = vmatpush.msrb.mxu1 %v270_v0  ;;  %v349_v59 = vld [vmem:[#allocation8 + $0x280] sm:$0xff]  ;;  %v446_v0 = vld [vmem:[#allocation8 + $0x3f0] sm:$0xff] }
  0x3c   :  { %295 = vmatpush.msrb.mxu0 %v254_v16  ;;  %367 = vmatpush.msrb.mxu2 %v348_v25  ;;  %v333_v62 = vld [vmem:[#allocation8 + $0x200] sm:$0xff]  ;;  %v438_v25 = vld [vmem:[#allocation8 + $0x3b0] sm:$0xff] }
  0x3d   :  { %316 = vmatpush.msrb.mxu1 %v269_v13  ;;  %387 = vmatpush.msrb.mxu3 %v364_v23  ;;  %v441_v13 = vld [vmem:[#allocation8 + $0x3c8] sm:$0xff]  ;;  %v440_v14 = vld [vmem:[#allocation8 + $0x3c0] sm:$0xff] }
  0x3e   :  { %296 = vmatpush.msrb.mxu0 %v253_v18  ;;  %368 = vmatpush.msrb.mxu2 %v347_v26  ;;  %v283_v16 = vld [vmem:[#allocation10 + $0x2] sm:$0x3] }
  0x3f   :  { %317 = vmatpush.msrb.mxu1 %v268_v15  ;;  %388 = vmatpush.msrb.mxu3 %v363_v24  ;;  %v439_v15 = vld [vmem:[#allocation8 + $0x3b8] sm:$0xff]  ;;  %v425_v24 = vld [vmem:[#allocation8 + $0x348] sm:$0xff]  ;;  %v424_v26 = vld [vmem:[#allocation8 + $0x340] sm:$0xff] }
  0x40   :  { %297 = vmatpush.msrb.mxu0 %v252_v20  ;;  %369 = vmatpush.msrb.mxu2 %v346_v28  ;;  %v423_v28 = vld [vmem:[#allocation8 + $0x338] sm:$0xff] }
  0x41   :  { %318 = vmatpush.msrb.mxu1 %v267_v17  ;;  %389 = vmatpush.msrb.mxu3 %v362_v27  ;;  %v437_v27 = vld [vmem:[#allocation8 + $0x3a8] sm:$0xff] }
  0x42   :  { %298 = vmatpush.msrb.mxu0 %v251_v21  ;;  %370 = vmatpush.msrb.mxu2 %v345_v30  ;;  %v422_v30 = vld [vmem:[#allocation8 + $0x330] sm:$0xff] }
  0x43   :  { %319 = vmatpush.msrb.mxu1 %v266_v19  ;;  %390 = vmatpush.msrb.mxu3 %v361_v29  ;;  %v436_v29 = vld [vmem:[#allocation8 + $0x3a0] sm:$0xff] }
  0x44   :  { %299 = vmatpush.msrb.mxu0 %v250_v22  ;;  %371 = vmatpush.msrb.mxu2 %v344_v32  ;;  %v421_v32 = vld [vmem:[#allocation8 + $0x328] sm:$0xff] }
  0x45   :  { %391 = vmatpush.msrb.mxu3 %v360_v31  ;;  %v435_v31 = vld [vmem:[#allocation8 + $0x398] sm:$0xff] }
  0x46   :  { %372 = vmatpush.msrb.mxu2 %v343_v34  ;;  %v420_v34 = vld [vmem:[#allocation8 + $0x320] sm:$0xff] }
  0x47   :  { %392 = vmatpush.msrb.mxu3 %v359_v33  ;;  %v434_v33 = vld [vmem:[#allocation8 + $0x390] sm:$0xff] }
  0x48   :  { %373 = vmatpush.msrb.mxu2 %v342_v46 }
  0x49   :  { %393 = vmatpush.msrb.mxu3 %v358_v35  ;;  %v433_v35 = vld [vmem:[#allocation8 + $0x388] sm:$0xff] }
  0x4a   :  { %374 = vmatpush.msrb.mxu2 %v341_v48 }
  0x4b   :  { %394 = vmatpush.msrb.mxu3 %v357_v36  ;;  %v419_v36 = vld [vmem:[#allocation8 + $0x318] sm:$0xff] }
  0x4c   :  { %375 = vmatpush.msrb.mxu2 %v340_v50 }
  0x4d   :  { %395 = vmatpush.msrb.mxu3 %v356_v37  ;;  %v432_v37 = vld [vmem:[#allocation8 + $0x380] sm:$0xff] }
  0x4e   :  { %376 = vmatpush.msrb.mxu2 %v339_v52 }
  0x4f   :  { %396 = vmatpush.msrb.mxu3 %v355_v47 }
  0x50   :  { %377 = vmatpush.msrb.mxu2 %v338_v54 }
  0x51   :  { %397 = vmatpush.msrb.mxu3 %v354_v49  ;;  %v449_v49 = vld [vmem:[#allocation10 + $0x6] sm:$0x3] }
  0x52   :  { %378 = vmatpush.msrb.mxu2 %v337_v56  ;;  %v555_v56 = vld [vmem:[#allocation5] ss:$0 sm:$0xff] }
  0x53   :  { %398 = vmatpush.msrb.mxu3 %v353_v51 }
  0x54   :  { %379 = vmatpush.msrb.mxu2 %v336_v58 }
  0x55   :  { %399 = vmatpush.msrb.mxu3 %v352_v53 }
  0x56   :  { %380 = vmatpush.msrb.mxu2 %v335_v60 }
  0x57   :  { %400 = vmatpush.msrb.mxu3 %v351_v55 }
  0x59   :  { %401 = vmatpush.msrb.mxu3 %v350_v57 }
  0x5b   :  { %402 = vmatpush.msrb.mxu3 %v349_v59 }
  0x9c   :  { %v134_v1 = vpop.f32.mrf.mxu0 }
  0x9d   :  { %v135_v2 = vadd.f32 %v134_v1, %v109_v61  ;;  %v154_v3 = vpop.f32.mrf.mxu1  ;;  %v334_v61 = vld [vmem:[#allocation8 + $0x208] sm:$0xff]  ;;  %v431_v1 = vld [vmem:[#allocation8 + $0x378] sm:$0xff] }
  0x9e   :  { %v155_v4 = vadd.f32 %v154_v3, %v110_v63  ;;  %381 = vmatpush.msrb.mxu2 %v334_v61  ;;  %v447_v63 = vld [vmem:[#allocation8 + $0x3f8] sm:$0xff]  ;;  %v445_v3 = vld [vmem:[#allocation8 + $0x3e8] sm:$0xff]  ;;  %450 = vmatpush.msra.mxu0 %v431_v1 }
  0x9f   :  { %556 = vtanh.f32 %v135_v2  ;;  %470 = vmatpush.msra.mxu1 %v447_v63  ;;  %v430_v2 = vld [vmem:[#allocation8 + $0x370] sm:$0xff] }
  0xa0   :  { %v158_v5 = vmax.f32 %v155_v4, 0.0  ;;  %382 = vmatpush.msrb.mxu2 %v333_v62  ;;  %v429_v4 = vld [vmem:[#allocation8 + $0x368] sm:$0xff]  ;;  %451 = vmatpush.msra.mxu0 %v430_v2 }
  0xa1   :  { %471 = vmatpush.msra.mxu1 %v446_v0 }
  0xa2   :  { %v162_v7 = vrot.slane %v158_v5, 7  ;;  %v444_v5 = vld [vmem:[#allocation8 + $0x3e0] sm:$0xff]  ;;  %452 = vmatpush.msra.mxu0 %v429_v4 }
  0xa3   :  { %472 = vmatpush.msra.mxu1 %v445_v3 }
  0xa4   :  { %532 = vmatmul.msk.f32.vlgmr.msra.gmra.mxu3 %vm785_vm2, %v162_v7  ;;  %v428_v7 = vld [vmem:[#allocation8 + $0x360] sm:$0xff] }
  0xa5   :  { %v557_v10 = vpop.eup %556  ;;  %473 = vmatpush.msra.mxu1 %v444_v5  ;;  %453 = vmatpush.msra.mxu0 %v428_v7 }
  0xa6   :  { %v166_v11 = vsel %vm165_vm1, %v557_v10, %v789_v9  ;;  %v427_v10 = vld [vmem:[#allocation8 + $0x358] sm:$0xff] }
  0xa7   :  { %217 = vmatmul.f32.vlgmr.msra.gmra.mxu2 %v166_v11  ;;  %v442_v11 = vld [vmem:[#allocation8 + $0x3d0] sm:$0xff]  ;;  %474 = vmatpush.msra.mxu1 %v443_v8 }
  0xa8   :  { %454 = vmatpush.msra.mxu0 %v427_v10 }
  0xa9   :  { %475 = vmatpush.msra.mxu1 %v442_v11 }
  0xaa   :  { %455 = vmatpush.msra.mxu0 %v426_v12 }
  0xab   :  { %476 = vmatpush.msra.mxu1 %v441_v13 }
  0xac   :  { %456 = vmatpush.msra.mxu0 %v425_v24 }
  0xad   :  { %477 = vmatpush.msra.mxu1 %v440_v14 }
  0xae   :  { %457 = vmatpush.msra.mxu0 %v424_v26 }
  0xaf   :  { %478 = vmatpush.msra.mxu1 %v439_v15 }
  0xb0   :  { %458 = vmatpush.msra.mxu0 %v423_v28 }
  0xb1   :  { %479 = vmatpush.msra.mxu1 %v438_v25 }
  0xb2   :  { %459 = vmatpush.msra.mxu0 %v422_v30 }
  0xb3   :  { %480 = vmatpush.msra.mxu1 %v437_v27 }
  0xb4   :  { %460 = vmatpush.msra.mxu0 %v421_v32 }
  0xb5   :  { %481 = vmatpush.msra.mxu1 %v436_v29 }
  0xb6   :  { %461 = vmatpush.msra.mxu0 %v420_v34 }
  0xb7   :  { %482 = vmatpush.msra.mxu1 %v435_v31 }
  0xb8   :  { %462 = vmatpush.msra.mxu0 %v419_v36 }
  0xb9   :  { %483 = vmatpush.msra.mxu1 %v434_v33 }
  0xbb   :  { %484 = vmatpush.msra.mxu1 %v433_v35 }
  0xbd   :  { %485 = vmatpush.msra.mxu1 %v432_v37 }
 0x127   :  { %v238_v40 = vpop.f32.mrf.mxu3 }
 0x12a   :  { %v218_v39 = vpop.f32.mrf.mxu2 }
 0x12b   :  { %v219_v41 = vadd.f32 %v218_v39, %v200_v38  ;;  %v418_v38 = vld [vmem:[#allocation8 + $0x310] sm:$0xff]  ;;  %v417_v39 = vld [vmem:[#allocation8 + $0x308] sm:$0xff] }
 0x12c   :  { %463 = vmatpush.msra.mxu0 %v418_v38 }
 0x12d   :  { %v239_v42 = vadd.f32 %v238_v40, %v219_v41  ;;  %v416_v40 = vld [vmem:[#allocation8 + $0x300] sm:$0xff] }
 0x12e   :  { %464 = vmatpush.msra.mxu0 %v417_v39  ;;  %v366_v41 = vld [vmem:[#allocation10 + $0x4] sm:$0x3] }
 0x12f   :  { %558 = vtanh.f32 %v239_v42  ;;  %v242_v43 = vmax.f32 %v239_v42, 0.0 }
 0x130   :  { %465 = vmatpush.msra.mxu0 %v416_v40 }
 0x131   :  { %535 = vmatmul.msk.f32.vlgmr.msrb.gmra.mxu1 %vm785_vm2, %v242_v43 }
 0x135   :  { %v559_v44 = vpop.eup %558 }
 0x136   :  { %v247_v45 = vsel %vm165_vm1, %v559_v44, %v789_v9 }
 0x137   :  { %300 = vmatmul.f32.vlgmr.msrb.gmra.mxu0 %v247_v45 }
 0x1ae   :  { %v321_v19 = vpop.f32.mrf.mxu1 }
 0x1b4   :  { %v301_v17 = vpop.f32.mrf.mxu0 }
 0x1b5   :  { %v302_v18 = vadd.f32 %v301_v17, %v283_v16 }
 0x1b7   :  { %v322_v20 = vadd.f32 %v321_v19, %v302_v18 }
 0x1b9   :  { %560 = vtanh.f32 %v322_v20  ;;  %v325_v21 = vmax.f32 %v322_v20, 0.0 }
 0x1bb   :  { %538 = vmatmul.msk.f32.vlgmr.msrb.gmra.mxu3 %vm785_vm2, %v325_v21 }
 0x1bf   :  { %v561_v22 = vpop.eup %560 }
 0x1c0   :  { %v330_v23 = vsel %vm165_vm1, %v561_v22, %v789_v9 }
 0x1c1   :  { %383 = vmatmul.f32.vlgmr.msrb.gmra.mxu2 %v330_v23 }
 0x23e   :  { %v404_v44 = vpop.f32.mrf.mxu3 }
 0x244   :  { %v384_v42 = vpop.f32.mrf.mxu2 }
 0x245   :  { %v385_v43 = vadd.f32 %v384_v42, %v366_v41 }
 0x247   :  { %v405_v45 = vadd.f32 %v404_v44, %v385_v43 }
 0x249   :  { %562 = vtanh.f32 %v405_v45  ;;  %v408_v46 = vmax.f32 %v405_v45, 0.0 }
 0x24b   :  { %541 = vmatmul.msk.f32.vlgmr.msra.gmra.mxu1 %vm785_vm2, %v408_v46 }
 0x24f   :  { %v563_v47 = vpop.eup %562 }
 0x250   :  { %v413_v48 = vsel %vm165_vm1, %v563_v47, %v789_v9 }
 0x251   :  { %466 = vmatmul.f32.vlgmr.msra.gmra.mxu0 %v413_v48 }
 0x2c8   :  { %v487_v52 = vpop.f32.mrf.mxu1 }
 0x2ce   :  { %v467_v50 = vpop.f32.mrf.mxu0 }
 0x2cf   :  { %v468_v51 = vadd.f32 %v467_v50, %v449_v49 }
 0x2d1   :  { %v488_v53 = vadd.f32 %v487_v52, %v468_v51 }
 0x2d3   :  { %v490_v54 = vmul.f32 0.5, %v488_v53  ;;  %v504_v9 = vrot.slane %v488_v53, 7 }
 0x2d5   :  { %v491_v55 = vmul.f32 1.442695, %v490_v54 }
 0x2d7   :  { %564 = vpow2.f32 %v491_v55 }
 0x2dd   :  { %v565_v57 = vpop.eup %564 }
 0x2de   :  { %v493_v58 = vadd.f32 1e-05, %v565_v57 }
 0x2e0   :  { %v498_v59 = vmul.f32 %v555_v56, %v493_v58 }
 0x2e2   :  { %v500_v60 = vrot.slane %v498_v59, 1 }
 0x2e4   :  { %v502_v6 = vadd.f32 %v500_v60, %v488_v53 }
 0x2e6   :  { %v506_v61 = vsel %vm165_vm1, %v502_v6, %v504_v9 }
 0x2e7   :  { %v508_v62 = vsel %vm507_vm3, %v506_v61, %v504_v9 }
 0x2e8   :  { %509 = vst [vmem:[#allocation11] sm:$0x7] %v508_v62 }
 0x2e9   :  { %520 = dma.vmem_to_hbm [thread:$0]  %s516_s25, 64, %s518_s28, [#allocation4]  }
 0x2ea   :  { %716 = dma.done.wait [#allocation4], 64  }
 0x2eb   :  { %717 = vsyncadd [#allocation4], 4294967232 }
 0x2ec   :  { %525 = vsyncpa [#allocation3], 1 }
 0x2ed   :  { %526 = vsyncpa [#allocation6], 1 }
 0x2ee   :  { %527 = vsyncpa [#allocation9], 1 }
 0x2ef   :  { %528 = vsyncpa [#allocation4], 1 }

</bundles_post_ra>
